<compile_context>
chip_gen: v6e
topology: v6e:2x2x1
jax: 0.10.0
libtpu: 0.0.40
codegen_flags: <defaults>
</compile_context>

<pallas_src>
import functools

import numpy as np
import jax
import jax.numpy as jnp
from jax.experimental import pallas as pl
from jax.experimental.pallas import tpu as pltpu


# ---------------------------------------------------------------------------
# Pallas kernel: fused (im2row LHS) x (banded weight) matmul + bias + ReLU.
# One grid step = one MXU matmul (m_tile, K) @ (K, n_tile), one dense f32
# epilogue, one lane-dense store.
# ---------------------------------------------------------------------------
def _deconv_mm_kernel(x_ref, w_ref, b_ref, o_ref):
    acc = jnp.dot(x_ref[...], w_ref[...], preferred_element_type=jnp.float32)
    o_ref[...] = jnp.maximum(acc + b_ref[...], 0.0).astype(o_ref.dtype)


def _round_up(x, m):
    return ((x + m - 1) // m) * m


def _pick_n_tile(nout):
    """Lane-dense output tile; prefer >=2 tiles so both v7x TCs get work."""
    for cand in (256, 128):
        if nout % cand == 0 and nout // cand >= 2:
            return cand
    for cand in (256, 128):
        if nout % cand == 0:
            return cand
    return nout            # full-extent block (legal; small configs only)


# ---------------------------------------------------------------------------
# Static geometry + banded-weight gather map for one deconv layer (host numpy,
# cached on the static config -> no runtime scatters under jit).
# ---------------------------------------------------------------------------
@functools.lru_cache(maxsize=None)
def _deconv_plan(k, s, p, H, W, Cin, Cout):
    ph = k - 1 - p                      # pad of the equivalent direct convolution
    Hout = (H - 1) * s - 2 * p + k
    Wout = (W - 1) * s - 2 * p + k
    assert Hout > 0 and Wout > 0
    hr = -(-Hout // s)                  # per-row-phase output rows
    wr = -(-Wout // s)                  # per-col-phase output cols
    kt = -(-k // s)                     # max kernel taps per phase

    # Phase decomposition of  out = conv(dilate(x, s) zero-padded by ph, flip(W)):
    #   out[q*s+rh, w*s+rw, c] = sum_{t,tw,ci} x[q+t+d_h[rh], w+tw+d_w[rw], ci]
    #                                          * Wf[a_h[rh]+t*s, a_w[rw]+tw*s, ci, c]
    a_h = [(ph - r) % s for r in range(s)]
    d_h = [(r + a_h[r] - ph) // s for r in range(s)]
    a_w = [(ph - r) % s for r in range(s)]
    d_w = [(r + a_w[r] - ph) // s for r in range(s)]

    pad_top = max(0, -min(d_h))
    pad_bot = max(0, max(d_h) + (hr - 1) + (kt - 1) - (H - 1))
    pad_lft = max(0, -min(d_w))
    pad_rgt = max(0, max(d_w) + (wr - 1) + (kt - 1) - (W - 1))
    h_pad = H + pad_top + pad_bot
    w_pad = W + pad_lft + pad_rgt
    row_start = [d_h[r] + pad_top for r in range(s)]
    off_min = min(row_start)
    off_max = max(row_start) + kt - 1
    R = off_max - off_min + 1           # im2row window height (rows per LHS row)

    wc_in = w_pad * Cin                 # one padded input row on the lane axis
    wcols = wr * s * Cout               # (w, col-phase, channel) lane-packed
    K = R * wc_in                       # contraction: row taps + cols + Cin folded
    Nout = s * wcols                    # output: row phases folded into N

    # Gather map: w_big[kk, nn] = flip(W).reshape(-1)[gidx[kk, nn]]
    # (last slot of the flattened weight is an appended zero).
    zero_slot = k * k * Cin * Cout
    gidx = np.full((K, Nout), zero_slot, dtype=np.int32)
    w_idx = np.arange(wr)
    ci_idx = np.arange(Cin)
    co_idx = np.arange(Cout)
    for rh in range(s):
        for t in range(kt):
            kh = a_h[rh] + t * s
            if kh >= k:
                continue
            koff = (row_start[rh] + t - off_min) * wc_in
            for rw in range(s):
                for tw in range(kt):
                    kw = a_w[rw] + tw * s
                    if kw >= k:
                        continue
                    rows = koff + (w_idx + tw + d_w[rw] + pad_lft) * Cin      # (wr,)
                    cols = rh * wcols + (w_idx * s + rw) * Cout               # (wr,)
                    row_i = rows[:, None, None] + ci_idx[None, :, None]
                    col_i = cols[:, None, None] + co_idx[None, None, :]
                    src = ((kh * k + kw) * Cin + ci_idx[None, :, None]) * Cout \
                        + co_idx[None, None, :]
                    gidx[row_i, col_i] = np.broadcast_to(src, (wr, Cin, Cout))

    return dict(Hout=Hout, Wout=Wout, hr=hr, wr=wr, pad_top=pad_top,
                pad_bot=pad_bot, pad_lft=pad_lft, pad_rgt=pad_rgt, h_pad=h_pad,
                w_pad=w_pad, off_min=off_min, R=R, wc_in=wc_in, wcols=wcols,
                K=K, Nout=Nout, gidx=gidx)


# ---------------------------------------------------------------------------
# One DeCNN2D_cell: ConvTranspose2d + ReLU.  NHWC in -> NHWC out.
# ---------------------------------------------------------------------------
def decnn2d_cell_forward_nhwc(x_nhwc, weight_pt, bias, *, stride=1, padding=1,
                              out_dtype=jnp.float32):
    """weight_pt: PyTorch ConvTranspose2d layout (Cin, Cout, kH, kW); bias: (Cout,)."""
    N, H, W, Cin = x_nhwc.shape
    Cin_w, Cout, kH, kW = weight_pt.shape
    assert Cin == Cin_w and kH == kW, "square kernels only (module passes an int)"
    k, s, p = int(kH), int(stride), int(padding)
    assert 0 <= p <= k - 1, "padding > kernel_size - 1 not supported"

    plan = _deconv_plan(k, s, p, int(H), int(W), int(Cin), int(Cout))
    hr, wr = plan["hr"], plan["wr"]
    K, Nout = plan["K"], plan["Nout"]
    Hout, Wout = plan["Hout"], plan["Wout"]
    R, off_min, wc_in = plan["R"], plan["off_min"], plan["wc_in"]

    # Banded weight: single gather of the flipped kernel via host-precomputed
    # indices (no runtime scatters).  bf16 operands for the MXU.
    w_f = jnp.transpose(weight_pt, (2, 3, 0, 1))[::-1, ::-1, :, :]       # (k,k,Cin,Cout)
    w_flat = jnp.concatenate([w_f.reshape(-1),
                              jnp.zeros((1,), w_f.dtype)]).astype(jnp.bfloat16)
    w_big = w_flat[plan["gidx"]]                                         # (K, Nout)

    # im2row LHS: small border pad of the ORIGINAL x (no stride^2 dilation),
    # row taps folded onto the lane axis, batch + per-phase rows folded into M.
    x16 = x_nhwc.astype(jnp.bfloat16)
    xp = jnp.pad(x16, ((0, 0), (plan["pad_top"], plan["pad_bot"]),
                       (plan["pad_lft"], plan["pad_rgt"]), (0, 0)))
    xf = xp.reshape(N, plan["h_pad"], wc_in)
    lhs = jnp.concatenate(
        [xf[:, o:o + hr, :] for o in range(off_min, off_min + R)],
        axis=-1).reshape(N * hr, K)

    M_total = N * hr
    m_tile = min(128, _round_up(M_total, 16))
    M_pad = _round_up(M_total, m_tile)
    if M_pad != M_total:
        lhs = jnp.pad(lhs, ((0, M_pad - M_total), (0, 0)))

    n_tile = _pick_n_tile(Nout)

    bias_big = jnp.tile(bias.astype(jnp.float32).reshape(1, Cout),
                        (1, s * wr * s))                                  # (1, Nout)

    grid = (M_pad // m_tile, Nout // n_tile)
    out = pl.pallas_call(
        _deconv_mm_kernel,
        out_shape=jax.ShapeDtypeStruct((M_pad, Nout), out_dtype),
        grid=grid,
        in_specs=[
            pl.BlockSpec((m_tile, K), lambda i, j: (i, 0)),
            pl.BlockSpec((K, n_tile), lambda i, j: (0, j)),
            pl.BlockSpec((1, n_tile), lambda i, j: (0, j)),
        ],
        out_specs=pl.BlockSpec((m_tile, n_tile), lambda i, j: (i, j)),
        compiler_params=pltpu.CompilerParams(
            dimension_semantics=("parallel", "parallel")),
    )(lhs, w_big, bias_big)

    # Free un-flatten: memory order is (n, q, rh, w, rw, c) -> NHWC, then trim
    # any per-phase padding when Hout/Wout are not multiples of the stride.
    out = out[:M_total].reshape(N, hr * s, wr * s, Cout)[:, :Hout, :Wout, :]
    return out


# ---------------------------------------------------------------------------
# Decoder (stack of DeCNN2D_cell layers) and parameter init (orthogonal weights).
# ---------------------------------------------------------------------------
def orthogonal_init(key, shape, dtype=jnp.float32):
    """Mimics nn.init.orthogonal_: flatten to (shape[0], prod(rest)); orthonormal rows."""
    rows = shape[0]
    cols = int(np.prod(shape[1:]))
    flat_shape = (cols, rows) if rows < cols else (rows, cols)
    a = jax.random.normal(key, flat_shape, dtype)
    q, r = jnp.linalg.qr(a)
    q = q * jnp.sign(jnp.diag(r))
    if rows < cols:
        q = q.T
    return q.reshape(shape)


def init_decoder_params(key, channel_input, channel_hidden, kernel_size, stride,
                        padding, n_layers):
    def as_list(v):
        return list(v) if isinstance(v, (list, tuple)) else [v] * n_layers
    hid, ks, st, pd = map(as_list, (channel_hidden, kernel_size, stride, padding))
    assert len(hid) == len(ks) == len(st) == len(pd) == n_layers
    params, in_c = [], channel_input
    for i in range(n_layers):
        key, sub = jax.random.split(key)
        w = orthogonal_init(sub, (in_c, hid[i], ks[i], ks[i]))  # ConvTranspose2d layout
        b = jnp.zeros((hid[i],), jnp.float32)
        params.append(dict(weight=w, bias=b, stride=st[i], padding=pd[i]))
        in_c = hid[i]
    return params


def decoder_forward(x_nchw, params):
    """Decoder.forward: NCHW in -> NCHW out; layers run in NHWC internally.
    Intermediate activations stay bf16 (emitted from the kernel epilogue) to
    halve inter-layer HBM traffic; the final layer emits float32."""
    x = jnp.transpose(x_nchw, (0, 2, 3, 1))
    n = len(params)
    for i, prm in enumerate(params):
        dt = jnp.float32 if i == n - 1 else jnp.bfloat16
        x = decnn2d_cell_forward_nhwc(x, prm["weight"], prm["bias"],
                                      stride=prm["stride"], padding=prm["padding"],
                                      out_dtype=dt)
    return jnp.transpose(x, (0, 3, 1, 2))
# TODO(synk): optional BatchNorm2d branch (batch_norm=True) not implemented;
# the module default is batch_norm=False.


# ---------------------------------------------------------------------------
# Reference: ConvTranspose2d + ReLU via lax, with the same bf16 operand rounding.
# ---------------------------------------------------------------------------
def _reference_cell_nchw(x_nchw, prm):
    w = prm["weight"]
    k = w.shape[-1]
    s, p = prm["stride"], prm["padding"]
    xb = x_nchw.astype(jnp.bfloat16).astype(jnp.float32)
    wb = w.astype(jnp.bfloat16).astype(jnp.float32)
    conv = jax.lax.conv_general_dilated(
        xb, jnp.transpose(wb, (1, 0, 2, 3))[:, :, ::-1, ::-1],
        window_strides=(1, 1),
        padding=[(k - 1 - p,) * 2, (k - 1 - p,) * 2],
        lhs_dilation=(s, s),
        dimension_numbers=("NCHW", "OIHW", "NCHW"),
        precision=jax.lax.Precision.HIGHEST)
    return jnp.maximum(conv + prm["bias"][None, :, None, None], 0.0)


if __name__ == "__main__":
    key = jax.random.PRNGKey(0)

    # Decoder config: 2 upsample-by-2 deconv cells (ConvTranspose2d k=4, s=2, p=1 + ReLU)
    channel_input, channel_hidden = 4, [8, 8]
    kernel_size, stride, padding, n_layers = 4, 2, 1, 2
    N, H, W = 2, 8, 8

    key, kx = jax.random.split(key)
    x = jax.random.normal(kx, (N, channel_input, H, W), jnp.float32)
    params = init_decoder_params(key, channel_input, channel_hidden, kernel_size,
                                 stride, padding, n_layers)

    out = decoder_forward(x, params)
    out = jax.block_until_ready(out)
    assert out.shape == (N, channel_hidden[-1], 32, 32), out.shape

    # (a) Per-layer f32 check against the ConvTranspose2d reference (same bf16
    #     operand rounding, f32 accumulation), chained on the kernel's own outputs.
    cur = x
    for prm in params:
        got_nhwc = decnn2d_cell_forward_nhwc(
            jnp.transpose(cur, (0, 2, 3, 1)), prm["weight"], prm["bias"],
            stride=prm["stride"], padding=prm["padding"], out_dtype=jnp.float32)
        got = jnp.transpose(got_nhwc, (0, 3, 1, 2))
        ref = _reference_cell_nchw(cur, prm)
        assert jnp.allclose(got, ref, atol=2e-3, rtol=2e-3), \
            float(jnp.max(jnp.abs(got - ref)))
        cur = got

    # (b) Full decoder (bf16 intermediate activations) vs a reference chain that
    #     also rounds intermediates to bf16.
    ref_cur = x
    for i, prm in enumerate(params):
        ref_cur = _reference_cell_nchw(ref_cur, prm)
        if i != len(params) - 1:
            ref_cur = ref_cur.astype(jnp.bfloat16).astype(jnp.float32)
    assert jnp.allclose(out, ref_cur, atol=2e-2, rtol=2e-2), \
        float(jnp.max(jnp.abs(out - ref_cur)))

    # (c) Extra coverage: odd Hout/Wout with p=0 (stride 2, k=3) and a stride-1 cell.
    extra_cfgs = [
        dict(N=1, H=5, W=5, Cin=3, Cout=5, k=3, s=2, p=0),
        dict(N=2, H=6, W=7, Cin=4, Cout=8, k=3, s=1, p=1),
    ]
    for cfg in extra_cfgs:
        key, kx2, kw2 = jax.random.split(key, 3)
        xe = jax.random.normal(kx2, (cfg["N"], cfg["Cin"], cfg["H"], cfg["W"]),
                               jnp.float32)
        we = orthogonal_init(kw2, (cfg["Cin"], cfg["Cout"], cfg["k"], cfg["k"]))
        be = jax.random.normal(kw2, (cfg["Cout"],), jnp.float32) * 0.1
        prm = dict(weight=we, bias=be, stride=cfg["s"], padding=cfg["p"])
        got = jnp.transpose(decnn2d_cell_forward_nhwc(
            jnp.transpose(xe, (0, 2, 3, 1)), we, be, stride=cfg["s"],
            padding=cfg["p"], out_dtype=jnp.float32), (0, 3, 1, 2))
        ref = _reference_cell_nchw(xe, prm)
        assert got.shape == ref.shape, (got.shape, ref.shape)
        assert jnp.allclose(got, ref, atol=2e-3, rtol=2e-3), \
            float(jnp.max(jnp.abs(got - ref)))

    print("KERNEL_OK")
</pallas_src>

<mosaic_0001>
module attributes {stable_mosaic.version = 11 : i64} {
  func.func @_deconv_mm_kernel(%arg0: i32, %arg1: i32, %arg2: memref<16x120xbf16, #tpu.memory_space<vmem>>, %arg3: memref<120x128xbf16, #tpu.memory_space<vmem>>, %arg4: memref<1x128xf32, #tpu.memory_space<vmem>>, %arg5: memref<16x128xbf16, #tpu.memory_space<vmem>>) attributes {dimension_semantics = [#tpu.dimension_semantics<parallel>, #tpu.dimension_semantics<parallel>], iteration_bounds = array<i64: 1, 2>, scalar_prefetch = 0 : i64, scratch_operands = 0 : i64, tpu.core_type = #tpu.core_type<tc>, window_params = [{transform_indices = @transform_0, window_bounds = array<i64: 16, 120>}, {transform_indices = @transform_1, window_bounds = array<i64: 120, 128>}, {transform_indices = @transform_2, window_bounds = array<i64: 1, 128>}, {transform_indices = @transform_3, window_bounds = array<i64: 16, 128>}]} {
    %c0 = arith.constant 0 : index
    %c0_0 = arith.constant 0 : index
    %0 = vector.load %arg2[%c0, %c0_0] : memref<16x120xbf16, #tpu.memory_space<vmem>>, vector<16x120xbf16>
    %c0_1 = arith.constant 0 : index
    %c0_2 = arith.constant 0 : index
    %1 = vector.load %arg3[%c0_1, %c0_2] : memref<120x128xbf16, #tpu.memory_space<vmem>>, vector<120x128xbf16>
    %cst = arith.constant dense<0.000000e+00> : vector<16x128xf32>
    %2 = tpu.matmul %0, %1, %cst {dimension_numbers = #tpu.dot_dimension_numbers<[1], [0], [0], [1], [0, 0, 1, 1], [], []>} : vector<16x120xbf16>, vector<120x128xbf16>, vector<16x128xf32> -> vector<16x128xf32>
    %c0_3 = arith.constant 0 : index
    %c0_4 = arith.constant 0 : index
    %3 = vector.load %arg4[%c0_3, %c0_4] : memref<1x128xf32, #tpu.memory_space<vmem>>, vector<1x128xf32>
    %4 = vector.broadcast %3 : vector<1x128xf32> to vector<16x128xf32>
    %5 = arith.addf %2, %4 : vector<16x128xf32>
    %cst_5 = arith.constant 0.000000e+00 : f32
    %6 = vector.broadcast %cst_5 : f32 to vector<16x128xf32>
    %7 = arith.maximumf %5, %6 : vector<16x128xf32>
    %8 = arith.truncf %7 : vector<16x128xf32> to vector<16x128xbf16>
    %c0_6 = arith.constant 0 : index
    %c0_7 = arith.constant 0 : index
    %9 = vector.load %arg5[%c0_6, %c0_7] : memref<16x128xbf16, #tpu.memory_space<vmem>>, vector<16x128xbf16>
    tpu.vector_store %arg5[%c0_6, %c0_7], %8 {strides = array<i32>} : memref<16x128xbf16, #tpu.memory_space<vmem>>, vector<16x128xbf16>,
    return
  }
  func.func @transform_0(%arg0: i32, %arg1: i32) -> (i32, i32) {
    %c0_i32 = arith.constant 0 : i32
    %c0_i32_0 = arith.constant 0 : i32
    return %arg0, %c0_i32 : i32, i32
  }
  func.func @transform_1(%arg0: i32, %arg1: i32) -> (i32, i32) {
    %c0_i32 = arith.constant 0 : i32
    %c0_i32_0 = arith.constant 0 : i32
    return %c0_i32, %arg1 : i32, i32
  }
  func.func @transform_2(%arg0: i32, %arg1: i32) -> (i32, i32) {
    %c0_i32 = arith.constant 0 : i32
    %c0_i32_0 = arith.constant 0 : i32
    return %c0_i32, %arg1 : i32, i32
  }
  func.func @transform_3(%arg0: i32, %arg1: i32) -> (i32, i32) {
    %c0_i32 = arith.constant 0 : i32
    return %arg0, %arg1 : i32, i32
  }
}

</mosaic_0001>

<bundles_post_ra>
// kernel: tpu_custom_call.1
= control target key start
LH: loop header
LB: loop body
LE: loop exit
PB: predicated region body
PF: predicated region fallthrough
CT: control target
= control target key end

     0   :  { %8 = vsyncpa [#allocation3], 0  ;;  %s1010_s0 = inlined_call_operand.hbm [shape: bf16[16,120], index: 0, kind: input, shape index: {}]   ;;  %s1011_s1 = inlined_call_operand.hbm [shape: bf16[120,256], index: 1, kind: input, shape index: {}]   ;;  %s1012_s2 = inlined_call_operand.vmem [shape: f32[1,256], index: 2, kind: input, shape index: {}]   ;;  %s1013_s3 = inlined_call_operand.hbm [shape: bf16[16,256], index: 3, kind: output, shape index: {}]  }
   0x1   :  { %9 = vsyncpa [#allocation6], 0 }
   0x2   :  { %11 = vsyncpa [#allocation6 + $0x1], 0 }
   0x3   :  { %12 = vsyncpa [#allocation4], 0 }
   0x4   :  { %14 = vsyncpa [#allocation4 + $0x1], 0  ;;  %s824_s12 = smov 0   ;;  %s826_s13 = smov 0  }
   0x5   :  { %s828_s14 = smov 0   ;;  %s830_s15 = smov 0  }
   0x6   :  { %s832_s16 = smov 0   ;;  %s834_s17 = smov 0  }
   0x7 LB: > { %1020 = sst [smem:[#allocation11_spill]] %s791_s17  ;;  %s499_s18 = sadd.s32 4294967295, %s791_s17   ;;  %s791_s17 = sphi %s834_s17, %s20_s17   ;;  %s787_s16 = sphi %s832_s16, %s1041_s16   ;;  %s783_s15 = sphi %s830_s15, %s1040_s15   ;;  %s779_s14 = sphi %s828_s14, %s1039_s14   ;;  %s775_s13 = sphi %s826_s13, %s1038_s13   ;;  %s771_s12 = sphi %s824_s12, %s1037_s12  }
   0x8   : > { %s500_s19 = sadd.s32 4294967294, %s791_s17   ;;  %p72_p0 = scmp.ne.s32.totalorder %s779_s14, %s775_s13 }
   0x9   : > { %p73_p1 = scmp.eq.s32.totalorder %s791_s17, 0  ;;  %p78_p2 = scmp.ne.s32.totalorder %s775_s13, %s771_s12 }
   0xa   : > { %p861_p3 = scmp.eq.s32.totalorder %s499_s18, 0  ;;  %p130_p5 = scmp.eq.s32.totalorder %s499_s18, 1 }
   0xb   : > { %p865_p4 = por %p73_p1, %p72_p0  ;;  %p136_p7 = scmp.eq.s32.totalorder %s500_s19, 1 }
   0xc   : > { %p871_p6 = por %p861_p3, %p78_p2  ;;  %p875_p8 = por %p130_p5, %p72_p0 }
   0xd   : > { %p501_p9 = scmp.ge.s32.totalorder %s791_s17, 1  ;;  %p880_p10 = por %p136_p7, %p78_p2 }
   0xe   : > { %s1023_s22 = scalar_select %p871_p6, 1, 0 }
   0xf   : > { %s1024_s23 = scalar_select %p875_p8, 1, 0 }
  0x10   : > { %s1025_s24 = scalar_select %p880_p10, 1, 0 }
  0x11   : > { %p143_p11 = scmp.lt.s32.totalorder %s791_s17, 3  ;;  %s793_s26 = smov [#allocation2]  }
  0x12   : > { %1026 = sst [smem:[#allocation12_spill]] %s1025_s24  ;;  %s158_s27 = sshll.u32 %s793_s26, 4  ;;  %s159_s27 = int_to_ptr.vmem [resolvable:$true] %s158_s27 }
  0x13   : > { %p885_p12 = pnand %p501_p9, %p143_p11  ;;  %p584_p1 = scmp.lt.s32.totalorder %s791_s17, 2 }
  0x14   : > { %s29_s30 = sadd.s32 1, %s787_s16  ;;  %s664_s4 = scalar_lea.vmem %s159_s27, 128 }
  0x15   : > { %p571_p13 = pneg %p885_p12  ;;  %p901_p2 = pnand %p584_p1, %p865_p4 }
  0x16   : > { %p665_p9 = scmp.ne.s32.totalorder %s159_s27, %s664_s4  ;;  %p672_p0 = scmp.lt.s32.totalorder %s159_s27, %s159_s27 }
  0x17   : > { %p895_p5 = pnand %p571_p13, %p861_p3  ;;  %p673_p8 = scmp.lt.s32.totalorder %s664_s4, %s664_s4 }
  0x19   : > { %p655_p7 = pneg %p895_p5  ;;  %p674_p6 = por %p673_p8, %p672_p0 }
  0x1b   : > { %p667_p11 = pnand %p665_p9, %p655_p7 }
  0x1d   : > { %p668_p10 = pneg %p667_p11 }
  0x1f   : > { %p675_p13 = pnand %p674_p6, %p668_p10 }
  0x21   : > { %678 = shalt.err (!%p675_p13)
}
  0x22   : > { %s1019_s5 = smov 64   ;;  %s795_s6 = smov 4  }
  0x23   : > { %574 = dma.hbm_to_vmem [thread:$0]  (!%p895_p5), %s1010_s0, 128, %s159_s27, [#allocation3], %s1019_s5, %s1019_s5, %s795_s6  }
  0x24   : > { %p30_p4 = scmp.ge.s32.totalorder %s29_s30, 2  ;;  %s65_s9 = sadd.s32 1, %s779_s14 }
  0x25   : > { %s172_s10 = sand.u32 1, %s779_s14   ;;  %s504_s19 = sshll.u32 %s787_s16, 6 }
  0x26   : > { %s1043_s30 = smov (%p30_p4, %s29_s30), 0  ;;  %s561_s11 = smul.u32 60, %s172_s10 }
  0x27   : > { %s62_s18 = ssub.s32 %s787_s16, %s1043_s30  ;;  %s181_s28 = scalar_lea.hbm %s1011_s1, %s504_s19 }
  0x28   : > { %p63_p6 = scmp.eq.s32.totalorder %s62_s18, 0  ;;  %s176_s4 = scalar_lea.vmem [#allocation5], %s561_s11 }
  0x29   : > { %s182_s17 = sshll.u32 %s176_s4, 4  ;;  %s173_s27 = scalar_lea.sflag [#allocation6], %s172_s10  ;;  %s183_s17 = int_to_ptr.vmem [resolvable:$true] %s182_s17 }
  0x2a   : > { %s927_s24 = scalar_select %p63_p6, %s779_s14, %s65_s9  }
  0x2b   : > { %p681_p8 = pneg %p901_p2  ;;  %s692_s7 = scalar_lea.vmem %s183_s17, 960 }
  0x2c   : > { %p693_p10 = scmp.ne.s32.totalorder %s183_s17, %s692_s7  ;;  %s796_s8 = smov [#allocation5]  }
  0x2d   : > { %s697_s5 = sshll.u32 %s796_s8, 4  ;;  %s698_s5 = int_to_ptr.vmem [resolvable:$false] %s697_s5 }
  0x2e   : > { %p695_p0 = pnand %p693_p10, %p681_p8  ;;  %s699_s18 = scalar_lea.vmem %s698_s5, 1920 }
  0x2f   : > { %p700_p5 = scmp.lt.s32.totalorder %s183_s17, %s698_s5  ;;  %p701_p7 = scmp.lt.s32.totalorder %s699_s18, %s692_s7 }
  0x30   : > { %p696_p1 = pneg %p695_p0 }
  0x31   : > { %p702_p9 = por %p701_p7, %p700_p5 }
  0x33   : > { %p703_p11 = pnand %p702_p9, %p696_p1 }
  0x35   : > { %706 = shalt.err (!%p703_p11)
}
  0x36   : > { %s797_s11 = smov 128   ;;  %s1030_s9 = smov 64  }
  0x37   : > { %578 = dma.hbm_to_vmem [thread:$0]  (!%p901_p2), %s181_s28, 960, %s183_s17, %s173_s27, %s797_s11, %s1030_s9, %s795_s6  }
  0x38   : > { %200 = sbr.rel (%p885_p12) target bundleno = 318 (0x13e), region = 32 }
  0x3d   : > { %758 = dma.done.wait (%p861_p3), [#allocation3], 128  }
  0x3e   : > { %760 = vsyncadd (%p861_p3), [#allocation3], 4294967168  ;;  %s942_s5 = sand.u32 1, %s775_s13   ;;  %p1031_p13 = scmp.ne.s32.totalorder %s1023_s22, 0 }
  0x3f   : > { %s562_s10 = smul.u32 60, %s942_s5  ;;  %s207_s29 = scalar_lea.sflag [#allocation6], %s942_s5 }
  0x41   : > { %s210_s19 = scalar_lea.vmem [#allocation5], %s562_s10 }
  0x42   : > { %762 = dma.done.wait (%p1031_p13), %s207_s29, 960  }
  0x43   : > { %764 = vsyncadd (%p1031_p13), %s207_s29, 4294966336  ;;  %v798_v0 = vmov 0.0   ;;  %vm799_vm0 = vmmov 0   ;;  %vm320_vm1 = vcmask 1043456   ;;  %v644_v1 = vld [vmem:[%s210_s19 + $0x38] ss:$0 sps:$4 sm:$0xff]  }
  0x44   : > { %541 = vmatprep.subr.bf16.mxu0 %v798_v0  ;;  %557 = vmatprep.mubr.msk.bf16.mxu0 %vm799_vm0, %v798_v0  ;;  %v322_v2 = vsel %vm320_vm1, %v644_v1, 0  ;;  %v645_v3 = vld [vmem:[%s210_s19 + $0x30] sm:$0xff]   ;;  %v646_v4 = vld [vmem:[%s210_s19 + $0x28] sm:$0xff]   ;;  %v647_v5 = vld [vmem:[%s210_s19 + $0x20] sm:$0xff]   ;;  %vm316_vm2 = vcmask 982016   ;;  %p237_p3 = scmp.lt.s32.totalorder %s783_s15, 1 }
  0x45   : > { %542 = vmatpush3.bf16.msra.mxu0 %v322_v2  ;;  %v648_v6 = vld [vmem:[%s210_s19 + $0x18] sm:$0xff]   ;;  %v649_v7 = vld [vmem:[%s210_s19 + $0x10] sm:$0xff]   ;;  %v650_v8 = vld [vmem:[%s210_s19 + $0x8] sm:$0xff]   ;;  %s507_s6 = sshll.u32 %s942_s5, 3  ;;  %s522_s28 = sshll.u32 %s783_s15, 6 }
  0x46   : > { %543 = vmatprep.subr.bf16.mxu0 %v798_v0  ;;  %v651_v9 = vld [vmem:[%s210_s19] sm:$0xff]   ;;  %s238_s17 = scalar_select %p237_p3, %s783_s15, 1 }
  0x47   : > { %v652_v10 = vld [vmem:[#allocation2] sm:$0xff]   ;;  %s235_s21 = scalar_lea.vmem [#allocation7], %s507_s6  ;;  %s962_s7 = scalar_lea.hbm %s1013_s3, %s522_s28 }
  0x48   : > { %s239_s25 = scalar_lea.vmem %s1012_s2, %s238_s17  ;;  %s393_s26 = sshll.u32 %s235_s21, 4  ;;  %s957_s26 = int_to_ptr.vmem [resolvable:$true] %s393_s26 }
  0x49   : > { %544 = vmatpush3.bf16.msra.mxu0 %v645_v3  ;;  %v508_v11 = vld [vmem:[%s239_s25] ss:$0 sm:$0xff]  ;;  %s378_s8 = scalar_lea.sflag [#allocation4], %s942_s5  ;;  %s707_s18 = scalar_lea.vmem %s957_s26, 128 }
  0x4a   : > { %545 = vmatprep.subr.bf16.mxu0 %v798_v0  ;;  %p708_p12 = scmp.ne.s32.totalorder %s957_s26, %s707_s18  ;;  %p1032_p2 = scmp.ne.s32.totalorder %s1024_s23, 0 }
  0x4b   : > { %s800_s15 = smov [#allocation7]  }
  0x4c   : > { %p709_p4 = pnand %p708_p12, %p1032_p2  ;;  %s711_s11 = sshll.u32 %s800_s15, 4  ;;  %s712_s11 = int_to_ptr.vmem [resolvable:$false] %s711_s11 }
  0x4d   : > { %546 = vmatpush3.bf16.msra.mxu0 %v646_v4  ;;  %s713_s9 = scalar_lea.vmem %s712_s11, 256  ;;  %p714_p8 = scmp.lt.s32.totalorder %s957_s26, %s712_s11 }
  0x4e   : > { %547 = vmatprep.subr.bf16.mxu0 %v798_v0  ;;  %p710_p6 = pneg %p709_p4  ;;  %p715_p10 = scmp.lt.s32.totalorder %s713_s9, %s707_s18 }
  0x50   : > { %p716_p0 = por %p715_p10, %p714_p8 }
  0x51   : > { %548 = vmatpush3.bf16.msra.mxu0 %v647_v5 }
  0x52   : > { %549 = vmatprep.subr.bf16.mxu0 %v798_v0  ;;  %p717_p1 = pnand %p716_p0, %p710_p6 }
  0x55   : > { %550 = vmatpush3.bf16.msra.mxu0 %v648_v6 }
  0x56   : > { %551 = vmatprep.subr.bf16.mxu0 %v798_v0 }
  0x59   : > { %552 = vmatpush3.bf16.msra.mxu0 %v649_v7 }
  0x5a   : > { %553 = vmatprep.subr.bf16.mxu0 %v798_v0 }
  0x5d   : > { %554 = vmatpush3.bf16.msra.mxu0 %v650_v8 }
  0x5e   : > { %555 = vmatprep.subr.bf16.mxu0 %v798_v0 }
  0x61   : > { %556 = vmatpush3.bf16.msra.mxu0 %v651_v9 }
  0x64   : > { %558 = vmatmul.mubr.msk.bf16.vlgmr.msra.gmra.mxu0 %vm316_vm2, %v652_v10 }
 0x124   : > { %v358_v12 = vpop.f32.mrf.mxu0 }
 0x125   : > { %v359_v14 = vadd.f32 %v508_v11, %v358_v12 }
 0x126   : > { %v559_v13 = vpop.f32.mrf.mxu0 }
 0x127   : > { %v365_v18 = vmax.f32 %v359_v14, 0.0 }
 0x128   : > { %v361_v15 = vpop.f32.mrf.mxu0 }
 0x129   : > { %v362_v16 = vadd.f32 %v508_v11, %v361_v15 }
 0x12a   : > { %v560_v17 = vpop.f32.mrf.mxu0 }
 0x12b   : > { %v366_v19 = vmax.f32 %v362_v16, 0.0 }
 0x12d   : > { %v530_v20 = vpack.c.bf16 %v366_v19, %v365_v18 }
 0x12f   : > { %531 = vst [vmem:[%s235_s21] sm:$0xff] %v530_v20  }
 0x130   : > { %720 = shalt.err (!%p717_p1)
}
 0x131   : > { %s721_s10 = scalar_lea.hbm %s962_s7, 128  ;;  %s725_s17 = scalar_lea.hbm %s1013_s3, 256 }
 0x132   : > { %p722_p5 = scmp.ne.s32.totalorder %s962_s7, %s721_s10  ;;  %p726_p11 = scmp.lt.s32.totalorder %s962_s7, %s1013_s3 }
 0x133   : > { %p727_p13 = scmp.lt.s32.totalorder %s725_s17, %s721_s10 }
 0x134   : > { %p723_p7 = pnand %p722_p5, %p1032_p2 }
 0x135   : > { %p728_p3 = por %p727_p13, %p726_p11 }
 0x136   : > { %p724_p9 = pneg %p723_p7 }
 0x138   : > { %p729_p12 = pnand %p728_p3, %p724_p9 }
 0x13a   : > { %732 = shalt.err (!%p729_p12)
}
 0x13b   : > { %s801_s25 = smov 64   ;;  %s802_s6 = smov 128  }
 0x13c   : > { %s803_s21 = smov 4  }
 0x13d   : > { %569 = dma.vmem_to_hbm [thread:$0]  (%p1032_p2), %s957_s26, 128, %s962_s7, %s378_s8, %s801_s25, %s802_s6, %s803_s21  }
 0x13e PF: > { %s1033_s28 = sld [smem:[#allocation12_spill]]  ;;  %s408_s27 = sand.u32 1, %s771_s12  }
 0x13f   : > { %s1034_s4 = sld [smem:[#allocation11_spill]]  ;;  %s409_s18 = scalar_lea.sflag [#allocation4], %s408_s27 }
 0x144   : > { %p1035_p4 = scmp.ne.s32.totalorder %s1033_s28, 0 }
 0x145   : > { %p1036_p6 = scmp.ge.s32.totalorder %s1034_s4, 2 }
 0x147   : > { %p580_p8 = pnand %p1036_p6, %p1035_p4 }
 0x149   : > { %p581_p10 = pneg %p580_p8 }
 0x14b   : > { %766 = dma.done.wait (%p581_p10), %s409_s18, 128  }
 0x14c   : > { %768 = vsyncadd (%p581_p10), %s409_s18, 4294967168  ;;  %s20_s17 = sadd.s32 1, %s1034_s4   ;;  %s1037_s12 = smov %s775_s13 }
 0x14d   : > { %p17_p0 = scmp.ge.s32.totalorder %s20_s17, 4   ;;  %s1038_s13 = smov %s779_s14 }
 0x14e   : > { %s1039_s14 = smov %s927_s24  ;;  %s1040_s15 = smov %s787_s16 }
 0x14f   : > { %s1041_s16 = smov %s1043_s30  ;;  %19 = sbr.rel (!%p17_p0) target bundleno = 7 (0x7), region = 86 }
 0x154   :  { %414 = vsyncpa [#allocation3], 1 }
 0x155   :  { %416 = vsyncpa [#allocation3 + $0x1], 1 }
 0x156   :  { %417 = vsyncpa [#allocation6], 1 }
 0x157   :  { %419 = vsyncpa [#allocation6 + $0x1], 1 }
 0x158   :  { %420 = vsyncpa [#allocation4], 1 }
 0x159   :  { %422 = vsyncpa [#allocation4 + $0x1], 1 }

</bundles_post_ra>
